<compile_context>
chip_gen: v5e
topology: v5e:2x2
jax: 0.10.0
libtpu: 0.0.40
codegen_flags: <defaults>
</compile_context>

<pallas_src>
import jax
import jax.numpy as jnp
from jax import lax
from jax.experimental import pallas as pl
from jax.experimental.pallas import tpu as pltpu


def _classifier_kernel(scales_ref, x_ref, w1_ref, b1_ref, w2_ref, b2_ref, o_ref):
    # scales: (2,) f32 in SMEM; x: [TB, D] bf16; w1: [H, D] bf16 (native Linear
    # layout); b1: [1, H] f32; w2: [O_pad, H] bf16; b2: [1, O_pad] f32.
    s1 = scales_ref[0]
    s2 = scales_ref[1]

    # Layer 1: h = relu(s1 * (x @ v1^T) + b1); contraction on the last dim of
    # both operands so no transposed weight copy is ever materialized.
    h = lax.dot_general(
        x_ref[...], w1_ref[...],
        dimension_numbers=(((1,), (1,)), ((), ())),
        preferred_element_type=jnp.float32,
    )                                                   # [TB, H] f32 accumulator
    h = jnp.maximum(h * s1 + b1_ref[...], 0.0)          # scale + bias + ReLU in f32

    # TODO(synk): Dropout is identity (eval / inference mode).

    # Layer 2: y = s2 * (h @ v2^T) + b2 (padded lanes are zero weight/bias).
    y = lax.dot_general(
        h.astype(w2_ref.dtype), w2_ref[...],
        dimension_numbers=(((1,), (1,)), ((), ())),
        preferred_element_type=jnp.float32,
    )                                                   # [TB, O_pad] f32
    o_ref[...] = (y * s2 + b2_ref[...]).astype(o_ref.dtype)


def simple_classifier(x, v1, g1, b1, v2, g2, b2, *, batch_tile=256):
    """Forward pass of SimpleClassifier.

    x:  [B, in_dim] float32
    v1: [hid_dim, in_dim] (PyTorch Linear weight layout), g1: scalar, b1: [hid_dim]
    v2: [out_dim, hid_dim],                               g2: scalar, b2: [out_dim]
    returns logits [B, out_dim] float32
    """
    B, D = x.shape
    H = v1.shape[0]
    O = v2.shape[0]

    # weight_norm(dim=None): w = (g / ||v||_F) * v.  Only the scalar is computed
    # here; it is applied to the accumulator inside the kernel.
    s1 = g1 * lax.rsqrt(jnp.sum(v1.astype(jnp.float32) ** 2))
    s2 = g2 * lax.rsqrt(jnp.sum(v2.astype(jnp.float32) ** 2))
    scales = jnp.stack([s1, s2]).astype(jnp.float32)          # (2,) -> SMEM

    # Lane-dense output: pad out_dim to a multiple of 128 (zero cols), slice after.
    O_pad = ((O + 127) // 128) * 128

    # bf16 operands for the MXU; biases stay f32.
    x_bf16 = x.astype(jnp.bfloat16)                                          # [B, D]
    w1_bf16 = v1.astype(jnp.bfloat16)                                        # [H, D]
    w2_bf16 = jnp.pad(v2.astype(jnp.bfloat16), ((0, O_pad - O), (0, 0)))     # [O_pad, H]
    b1_r = b1.astype(jnp.float32).reshape(1, H)                              # [1, H]
    b2_r = jnp.pad(b2.astype(jnp.float32), (0, O_pad - O)).reshape(1, O_pad) # [1, O_pad]

    # Batch tiling: TB multiple of 8 (or == B), weights resident across the grid.
    TB = B if B <= batch_tile else batch_tile
    grid = (pl.cdiv(B, TB),)

    out = pl.pallas_call(
        _classifier_kernel,
        out_shape=jax.ShapeDtypeStruct((B, O_pad), jnp.float32),
        grid_spec=pltpu.PrefetchScalarGridSpec(
            num_scalar_prefetch=0,
            grid=grid,
            in_specs=[
                pl.BlockSpec(memory_space=pltpu.MemorySpace.SMEM),  # scales (2,)
                pl.BlockSpec((TB, D), lambda i: (i, 0)),            # x tile (pipelined)
                pl.BlockSpec((H, D), lambda i: (0, 0)),             # w1 resident
                pl.BlockSpec((1, H), lambda i: (0, 0)),             # b1 resident
                pl.BlockSpec((O_pad, H), lambda i: (0, 0)),         # w2 resident
                pl.BlockSpec((1, O_pad), lambda i: (0, 0)),         # b2 resident
            ],
            out_specs=pl.BlockSpec((TB, O_pad), lambda i: (i, 0)),
        ),
        compiler_params=pltpu.CompilerParams(
            dimension_semantics=("parallel",),          # batch axis -> both TCs on v7x
            vmem_limit_bytes=32 * 1024 * 1024,
        ),
    )(scales, x_bf16, w1_bf16, b1_r, w2_bf16, b2_r)

    return out[:, :O]


if __name__ == "__main__":
    # Small shapes consistent with the module: batch=8, in_dim=32, hid=64, out=16
    B, IN_DIM, HID_DIM, OUT_DIM = 8, 32, 64, 16

    key = jax.random.PRNGKey(0)
    kx, kv1, kb1, kv2, kb2 = jax.random.split(key, 5)

    x = jax.random.normal(kx, (B, IN_DIM), dtype=jnp.float32)

    # Deterministic parameter init (shapes from nn.Linear in __init__)
    v1 = jax.random.normal(kv1, (HID_DIM, IN_DIM), dtype=jnp.float32) * 0.1
    b1 = jax.random.normal(kb1, (HID_DIM,), dtype=jnp.float32) * 0.1
    g1 = jnp.float32(1.3)   # weight_norm scalar gain
    v2 = jax.random.normal(kv2, (OUT_DIM, HID_DIM), dtype=jnp.float32) * 0.1
    b2 = jax.random.normal(kb2, (OUT_DIM,), dtype=jnp.float32) * 0.1
    g2 = jnp.float32(0.7)

    logits = simple_classifier(x, v1, g1, b1, v2, g2, b2)
    jax.block_until_ready(logits)

    # Reference check in plain JAX (f32).  bf16 matmul operands with f32
    # accumulation -> slightly loosened tolerance.
    w1_ref = (g1 / jnp.sqrt(jnp.sum(v1 * v1))) * v1
    w2_ref = (g2 / jnp.sqrt(jnp.sum(v2 * v2))) * v2
    ref = jnp.maximum(x @ w1_ref.T + b1, 0.0) @ w2_ref.T + b2
    assert logits.shape == (B, OUT_DIM)
    assert jnp.allclose(logits, ref, atol=3e-2, rtol=3e-2)

    print("KERNEL_OK")
</pallas_src>

<mosaic_0001>
module attributes {stable_mosaic.version = 11 : i64} {
  func.func @_classifier_kernel(%arg0: i32, %arg1: memref<2xf32, #tpu.memory_space<smem>>, %arg2: memref<8x32xbf16, #tpu.memory_space<vmem>>, %arg3: memref<64x32xbf16, #tpu.memory_space<vmem>>, %arg4: memref<1x64xf32, #tpu.memory_space<vmem>>, %arg5: memref<128x64xbf16, #tpu.memory_space<vmem>>, %arg6: memref<1x128xf32, #tpu.memory_space<vmem>>, %arg7: memref<8x128xf32, #tpu.memory_space<vmem>>) attributes {dimension_semantics = [#tpu.dimension_semantics<parallel>], iteration_bounds = array<i64: 1>, scalar_prefetch = 0 : i64, scratch_operands = 0 : i64, tpu.core_type = #tpu.core_type<tc>, window_params = [{transform_indices = @transform_0, window_bounds = array<i64: 2>}, {transform_indices = @transform_1, window_bounds = array<i64: 8, 32>}, {pipeline_mode = #tpu.pipeline_mode<synchronous>, transform_indices = @transform_2, window_bounds = array<i64: 64, 32>}, {pipeline_mode = #tpu.pipeline_mode<synchronous>, transform_indices = @transform_3, window_bounds = array<i64: 1, 64>}, {pipeline_mode = #tpu.pipeline_mode<synchronous>, transform_indices = @transform_4, window_bounds = array<i64: 128, 64>}, {pipeline_mode = #tpu.pipeline_mode<synchronous>, transform_indices = @transform_5, window_bounds = array<i64: 1, 128>}, {transform_indices = @transform_6, window_bounds = array<i64: 8, 128>}]} {
    %c0 = arith.constant 0 : index
    %0 = memref.load %arg1[%c0] : memref<2xf32, #tpu.memory_space<smem>>
    %c1 = arith.constant 1 : index
    %1 = memref.load %arg1[%c1] : memref<2xf32, #tpu.memory_space<smem>>
    %c0_0 = arith.constant 0 : index
    %c0_1 = arith.constant 0 : index
    %2 = vector.load %arg2[%c0_0, %c0_1] : memref<8x32xbf16, #tpu.memory_space<vmem>>, vector<8x32xbf16>
    %c0_2 = arith.constant 0 : index
    %c0_3 = arith.constant 0 : index
    %3 = vector.load %arg3[%c0_2, %c0_3] : memref<64x32xbf16, #tpu.memory_space<vmem>>, vector<64x32xbf16>
    %cst = arith.constant dense<0.000000e+00> : vector<8x64xf32>
    %4 = tpu.matmul %2, %3, %cst {dimension_numbers = #tpu.dot_dimension_numbers<[1], [1], [0], [0], [0, 0, 1, 0], [], []>} : vector<8x32xbf16>, vector<64x32xbf16>, vector<8x64xf32> -> vector<8x64xf32>
    %5 = vector.broadcast %0 : f32 to vector<8x64xf32>
    %6 = arith.mulf %4, %5 : vector<8x64xf32>
    %c0_4 = arith.constant 0 : index
    %c0_5 = arith.constant 0 : index
    %7 = vector.load %arg4[%c0_4, %c0_5] : memref<1x64xf32, #tpu.memory_space<vmem>>, vector<1x64xf32>
    %8 = vector.broadcast %7 : vector<1x64xf32> to vector<8x64xf32>
    %9 = arith.addf %6, %8 : vector<8x64xf32>
    %cst_6 = arith.constant 0.000000e+00 : f32
    %10 = vector.broadcast %cst_6 : f32 to vector<8x64xf32>
    %11 = arith.maximumf %9, %10 : vector<8x64xf32>
    %12 = arith.truncf %11 : vector<8x64xf32> to vector<8x64xbf16>
    %c0_7 = arith.constant 0 : index
    %c0_8 = arith.constant 0 : index
    %13 = vector.load %arg5[%c0_7, %c0_8] : memref<128x64xbf16, #tpu.memory_space<vmem>>, vector<128x64xbf16>
    %cst_9 = arith.constant dense<0.000000e+00> : vector<8x128xf32>
    %14 = tpu.matmul %12, %13, %cst_9 {dimension_numbers = #tpu.dot_dimension_numbers<[1], [1], [0], [0], [0, 0, 1, 0], [], []>} : vector<8x64xbf16>, vector<128x64xbf16>, vector<8x128xf32> -> vector<8x128xf32>
    %15 = vector.broadcast %1 : f32 to vector<8x128xf32>
    %16 = arith.mulf %14, %15 : vector<8x128xf32>
    %c0_10 = arith.constant 0 : index
    %c0_11 = arith.constant 0 : index
    %17 = vector.load %arg6[%c0_10, %c0_11] : memref<1x128xf32, #tpu.memory_space<vmem>>, vector<1x128xf32>
    %18 = vector.broadcast %17 : vector<1x128xf32> to vector<8x128xf32>
    %19 = arith.addf %16, %18 : vector<8x128xf32>
    %c0_12 = arith.constant 0 : index
    %c0_13 = arith.constant 0 : index
    %20 = vector.load %arg7[%c0_12, %c0_13] : memref<8x128xf32, #tpu.memory_space<vmem>>, vector<8x128xf32>
    tpu.vector_store %arg7[%c0_12, %c0_13], %19 {strides = array<i32>} : memref<8x128xf32, #tpu.memory_space<vmem>>, vector<8x128xf32>,
    return
  }
  func.func @transform_0(%arg0: i32) -> i32 {
    %c0_i32 = arith.constant 0 : i32
    %c0_i32_0 = arith.constant 0 : i32
    return %c0_i32 : i32
  }
  func.func @transform_1(%arg0: i32) -> (i32, i32) {
    %c0_i32 = arith.constant 0 : i32
    %c0_i32_0 = arith.constant 0 : i32
    return %arg0, %c0_i32 : i32, i32
  }
  func.func @transform_2(%arg0: i32) -> (i32, i32) {
    %c0_i32 = arith.constant 0 : i32
    %c0_i32_0 = arith.constant 0 : i32
    %c0_i32_1 = arith.constant 0 : i32
    return %c0_i32, %c0_i32_0 : i32, i32
  }
  func.func @transform_3(%arg0: i32) -> (i32, i32) {
    %c0_i32 = arith.constant 0 : i32
    %c0_i32_0 = arith.constant 0 : i32
    %c0_i32_1 = arith.constant 0 : i32
    return %c0_i32, %c0_i32_0 : i32, i32
  }
  func.func @transform_4(%arg0: i32) -> (i32, i32) {
    %c0_i32 = arith.constant 0 : i32
    %c0_i32_0 = arith.constant 0 : i32
    %c0_i32_1 = arith.constant 0 : i32
    return %c0_i32, %c0_i32_0 : i32, i32
  }
  func.func @transform_5(%arg0: i32) -> (i32, i32) {
    %c0_i32 = arith.constant 0 : i32
    %c0_i32_0 = arith.constant 0 : i32
    %c0_i32_1 = arith.constant 0 : i32
    return %c0_i32, %c0_i32_0 : i32, i32
  }
  func.func @transform_6(%arg0: i32) -> (i32, i32) {
    %c0_i32 = arith.constant 0 : i32
    %c0_i32_0 = arith.constant 0 : i32
    return %arg0, %c0_i32 : i32, i32
  }
}

</mosaic_0001>

<bundles_post_ra>
// kernel: tpu_custom_call.1
= control target key start
LH: loop header
LB: loop body
LE: loop exit
PB: predicated region body
PF: predicated region fallthrough
CT: control target
= control target key end

     0   :  { %11 = vsyncpa [#allocation4], 0  ;;  %s438_s0 = inlined_call_operand.vmem [shape: f32[2], index: 0, kind: input, shape index: {}]   ;;  %s439_s1 = inlined_call_operand.vmem [shape: bf16[8,32], index: 1, kind: input, shape index: {}]   ;;  %s440_s2 = inlined_call_operand.vmem [shape: bf16[64,32], index: 2, kind: input, shape index: {}]   ;;  %s441_s3 = inlined_call_operand.vmem [shape: f32[1,64], index: 3, kind: input, shape index: {}]   ;;  %s442_s4 = inlined_call_operand.vmem [shape: bf16[128,64], index: 4, kind: input, shape index: {}]   ;;  %s443_s5 = inlined_call_operand.vmem [shape: f32[1,128], index: 5, kind: input, shape index: {}]   ;;  %s444_s6 = inlined_call_operand.hbm [shape: f32[8,128], index: 6, kind: output, shape index: {}]  }
   0x1   :  { %12 = vsyncpa [#allocation3], 0  ;;  %s18_s23 = sshll.u32 %s438_s0, 4  ;;  %s336_s24 = smov [#allocation2]   ;;  %s19_s23 = int_to_ptr.vmem [resolvable:$true] %s18_s23 }
   0x2   :  { %21 = dma.vmem_to_smem %s19_s23, 16, %s336_s24, [#allocation4]  }
   0x3   :  { %332 = dma.done.wait [#allocation4], 16  }
   0x4   :  { %333 = vsyncadd [#allocation4], 4294967280 }
   0x5   :  { %36 = sfence }
   0x6   :  { %v283_v0 = vld [vmem:[%s440_s2 + $0x18] sm:$0xff]  ;;  %vm69_vm0 = vcmask 261120   ;;  %vm163_vm1 = vcmask 523264   ;;  %v282_v3 = vld [vmem:[%s440_s2 + $0x10] sm:$0xff]  ;;  %v281_v8 = vld [vmem:[%s440_s2 + $0x8] sm:$0xff]  ;;  %s38_s24 = sld [smem:[#allocation2]] }
   0x7   :  { %v83_v1 = vsel %vm69_vm0, %v283_v0, 0  ;;  %v291_v2 = vld [vmem:[%s442_s4 + $0x38] sm:$0xff]  ;;  %v290_v5 = vld [vmem:[%s442_s4 + $0x30] sm:$0xff]  ;;  %v80_v6 = vsel %vm69_vm0, %v282_v3, 0  ;;  %v289_v9 = vld [vmem:[%s442_s4 + $0x28] sm:$0xff]  ;;  %v77_v10 = vsel %vm69_vm0, %v281_v8, 0 }
   0x8   :  { %89 = vmatpush.bf16.xpose.msra.mxu0 %v83_v1  ;;  %v189_v4 = vsel %vm163_vm1, %v291_v2, 0  ;;  %v186_v7 = vsel %vm163_vm1, %v290_v5, 0  ;;  %v183_v11 = vsel %vm163_vm1, %v289_v9, 0  ;;  %v280_v12 = vld [vmem:[%s440_s2] sm:$0xff]  ;;  %v287_v16 = vld [vmem:[%s442_s4 + $0x18] sm:$0xff]  ;;  %v286_v19 = vld [vmem:[%s442_s4 + $0x10] sm:$0xff] }
   0x9   :  { %191 = vmatpush.bf16.xpose.msra.mxu1 %v189_v4  ;;  %v288_v13 = vld [vmem:[%s442_s4 + $0x20] sm:$0xff]  ;;  %v74_v14 = vsel %vm69_vm0, %v280_v12, 0  ;;  %v177_v18 = vsel %vm163_vm1, %v287_v16, 0  ;;  %v174_v20 = vsel %vm163_vm1, %v286_v19, 0  ;;  %v285_v21 = vld [vmem:[%s442_s4 + $0x8] sm:$0xff]  ;;  %s229_s27 = sld [smem:[#allocation2 + $0x1]] }
   0xa   :  { %v180_v15 = vsel %vm163_vm1, %v288_v13, 0  ;;  %v40_v17 = vld [vmem:[%s439_s1] sm:$0xf]  ;;  %v171_v22 = vsel %vm163_vm1, %v285_v21, 0  ;;  %s337_s0 = smov [#allocation5]  }
   0xb   :  { %v284_v23 = vld [vmem:[%s442_s4] sm:$0xff]  ;;  %s217_s29 = sshll.u32 %s337_s0, 4  ;;  %s218_s29 = int_to_ptr.vmem [resolvable:$true] %s217_s29 }
   0xc   :  { %v168_v24 = vsel %vm163_vm1, %v284_v23, 0  ;;  %v98_v25 = vstv %s38_s24  ;;  %v294_v26 = vld [vmem:[%s441_s3] ss:$0 sm:$0xff]  ;;  %s219_s3 = sshll.u32 %s444_s6, 4  ;;  %s220_s3 = int_to_ptr.hbm [resolvable:$true] %s219_s3 }
   0xd   :  { %v295_v34 = vld [vmem:[%s443_s5] ss:$0 sm:$0xff] }
   0xf   :  { %v204_v33 = vstv %s229_s27 }
  0x10   :  { %90 = vmatpush.bf16.xpose.msra.mxu0 %v80_v6 }
  0x11   :  { %192 = vmatpush.bf16.xpose.msra.mxu1 %v186_v7 }
  0x18   :  { %91 = vmatpush.bf16.xpose.msra.mxu0 %v77_v10 }
  0x19   :  { %193 = vmatpush.bf16.xpose.msra.mxu1 %v183_v11 }
  0x20   :  { %92 = vmatpush.bf16.xpose.msra.mxu0 %v74_v14 }
  0x21   :  { %194 = vmatpush.bf16.xpose.msra.mxu1 %v180_v15 }
  0x27   :  { %246 = vmatmul.msk.bf16.vlgmr.msra.gmra.mxu0 %vm69_vm0, %v40_v17 }
  0x29   :  { %195 = vmatpush.bf16.xpose.msra.mxu1 %v177_v18 }
  0x31   :  { %196 = vmatpush.bf16.xpose.msra.mxu1 %v174_v20 }
  0x39   :  { %197 = vmatpush.bf16.xpose.msra.mxu1 %v171_v22 }
  0x41   :  { %198 = vmatpush.bf16.xpose.msra.mxu1 %v168_v24 }
  0xa4   :  { %v94_v27 = vpop.f32.mrf.mxu0 }
  0xa5   :  { %v99_v28 = vmul.f32 %v98_v25, %v94_v27 }
  0xa7   :  { %v104_v29 = vadd.f32 %v294_v26, %v99_v28 }
  0xa9   :  { %v105_v30 = vmax.f32 %v104_v29, 0.0 }
  0xab   :  { %v106_v31 = vpack.c.bf16 %v105_v30, %v105_v30 }
  0xac   :  { %v96_v32 = vpop.f32.mrf.mxu0 }
  0xad   :  { %279 = vmatmul.msk.bf16.vlgmr.msra.gmra.mxu1 %vm163_vm1, %v106_v31 }
 0x12a   :  { %v200_v35 = vpop.f32.mrf.mxu1 }
 0x12b   :  { %v205_v36 = vmul.f32 %v204_v33, %v200_v35 }
 0x12d   :  { %v210_v37 = vadd.f32 %v295_v34, %v205_v36 }
 0x12f   :  { %211 = vst [vmem:[#allocation5] sm:$0xff] %v210_v37 }
 0x130   :  { %222 = dma.vmem_to_hbm [thread:$0]  %s218_s29, 128, %s220_s3, [#allocation3]  }
 0x132   :  { %v202_v38 = vpop.f32.mrf.mxu1 }
 0x133   :  { %334 = dma.done.wait [#allocation3], 128  }
 0x134   :  { %335 = vsyncadd [#allocation3], 4294967168 }
 0x135   :  { %227 = vsyncpa [#allocation3], 1 }
 0x136   :  { %228 = vsyncpa [#allocation4], 1 }

</bundles_post_ra>
